<compile_context>
chip_gen: v5e
topology: v5e:2x2
jax: 0.10.0
libtpu: 0.0.40
codegen_flags: <defaults>
</compile_context>

<pallas_src>
import functools

import numpy as np
import jax
import jax.numpy as jnp
from jax.experimental import pallas as pl
from jax.experimental.pallas import tpu as pltpu

LANE = 128  # TPU vreg lane width


def _round_up(n, m):
    return ((n + m - 1) // m) * m


def _act_dtype():
    """tanh dtype: bf16 where the EUP has a bf16 path (v6e/v7x), else f32."""
    try:
        kind = jax.devices()[0].device_kind.lower()
    except Exception:
        return jnp.float32
    return jnp.bfloat16 if ("v6" in kind or "v7" in kind) else jnp.float32


# ----------------------------------------------------------------------------
# Pallas kernel: fused group-linear + tanh, middle MLP, final linear.
# ----------------------------------------------------------------------------
def _deep_group_kernel(x_ref, wg_ref, bg_ref, w1_ref, b1_ref,
                       w2_ref, b2_ref, wf_ref, bf_ref, o_ref, *, act_dtype):
    # bf16 operands / f32 accumulation on the MXU; bias adds stay in f32,
    # tanh runs in `act_dtype` (bf16 on v6e/v7x, f32 on v5e).
    x = x_ref[...]                                              # bf16 tile
    h = jnp.dot(x, wg_ref[...], preferred_element_type=jnp.float32) + bg_ref[...]
    h = jnp.tanh(h.astype(act_dtype)).astype(jnp.bfloat16)
    h = jnp.dot(h, w1_ref[...], preferred_element_type=jnp.float32) + b1_ref[...]
    h = jnp.tanh(h.astype(act_dtype)).astype(jnp.bfloat16)
    h = jnp.dot(h, w2_ref[...], preferred_element_type=jnp.float32) + b2_ref[...]
    h = jnp.tanh(h.astype(act_dtype)).astype(jnp.bfloat16)
    out = jnp.dot(h, wf_ref[...], preferred_element_type=jnp.float32) + bf_ref[...]
    o_ref[...] = out.astype(o_ref.dtype)


def deep_group_net_forward(x, params, tile_b=2048, act_dtype=None):
    """x: (B, din) -> (B, dout) float32 device array.

    The PyTorch module's trailing `.double()` is applied on host (numpy) by
    the caller, since TPUs have no native float64 datapath.
    """
    B, din = x.shape
    dout = params["dout"]
    if act_dtype is None:
        act_dtype = _act_dtype()

    # torch does x.float(); we go straight to bf16 (identical to f32->bf16).
    x_bf = x.astype(jnp.bfloat16)

    # Batch tile: multiple of 8 sublanes; keep >= 2 grid steps whenever B > 8
    # so the "parallel" batch axis can be sharded across v7x's 2 TensorCores.
    half_b = _round_up(-(-B // 2), 8)
    tile_b = max(8, min(_round_up(tile_b, 8), half_b))
    grid = (pl.cdiv(B, tile_b),)          # ragged last block handled by Pallas

    weights = (params["Wg"], params["bg"], params["W1"], params["b1"],
               params["W2"], params["b2"], params["Wf"], params["bf"])

    in_specs = [pl.BlockSpec((tile_b, din), lambda i: (i, 0))]
    # Weights/biases: full-array blocks with constant index maps -> DMA'd once,
    # VMEM-resident across all grid steps.
    in_specs += [pl.BlockSpec(w.shape, lambda i: (0, 0)) for w in weights]
    # Un-padded output: last dim == dout == full array dim (satisfies (8,128)).
    out_specs = pl.BlockSpec((tile_b, dout), lambda i: (i, 0))

    out32 = pl.pallas_call(
        functools.partial(_deep_group_kernel, act_dtype=act_dtype),
        grid=grid,
        in_specs=in_specs,
        out_specs=out_specs,
        out_shape=jax.ShapeDtypeStruct((B, dout), jnp.float32),
        compiler_params=pltpu.CompilerParams(
            dimension_semantics=("parallel",),
            vmem_limit_bytes=32 * 1024 * 1024),
    )(x_bf, *weights)

    return out32


# ----------------------------------------------------------------------------
# Deterministic parameter construction (PyTorch Linear-style uniform init),
# packed block-sparse group weights, hidden widths zero-padded to 128 lanes,
# final projection kept at true `dout` columns (no padded output).
# ----------------------------------------------------------------------------
def _linear_init(key, fan_in, fan_out):
    kw, kb = jax.random.split(key)
    bound = 1.0 / np.sqrt(fan_in)
    W = jax.random.uniform(kw, (fan_out, fan_in), jnp.float32, -bound, bound)
    b = jax.random.uniform(kb, (fan_out,), jnp.float32, -bound, bound)
    return np.asarray(W), np.asarray(b)    # torch layout: (out, in)


def build_params(key, din, mid, dout, s_groups, weight_dtype=jnp.bfloat16):
    num_groups = len(s_groups)
    total_out = 2 * num_groups
    keys = jax.random.split(key, num_groups + 3)

    p0 = _round_up(total_out, LANE)   # padded group-layer width
    p1 = _round_up(mid, LANE)         # padded middle width
    p2 = _round_up(dout, LANE)        # padded pre-final width

    # Pack per-group Linear(len(group), 2) into one (din, p0) block-sparse
    # matrix; zero elsewhere -> exact equivalence with gather+linear+concat
    # (tanh(0 + 0) = 0, and zero weight rows contribute nothing downstream).
    Wg = np.zeros((din, p0), np.float32)
    bg = np.zeros((1, p0), np.float32)
    for k, (gk, group) in enumerate(s_groups.items()):
        W_g, b_g = _linear_init(keys[k], len(group), 2)      # (2, len(group))
        Wg[np.asarray(group), 2 * k:2 * k + 2] = W_g.T
        bg[0, 2 * k:2 * k + 2] = b_g

    def pad_wb(W, b, rows, cols):
        # W is torch-layout (out, in); store as (in, out), zero-padded.
        Wp = np.zeros((rows, cols), np.float32)
        bp = np.zeros((1, cols), np.float32)
        Wp[:W.shape[1], :W.shape[0]] = W.T
        bp[0, :b.shape[0]] = b
        return Wp, bp

    W1, b1 = _linear_init(keys[num_groups + 0], total_out, mid)
    W2, b2 = _linear_init(keys[num_groups + 1], mid, dout)
    Wf, bf = _linear_init(keys[num_groups + 2], dout, dout)

    W1p, b1p = pad_wb(W1, b1, p0, p1)
    W2p, b2p = pad_wb(W2, b2, p1, p2)
    Wfp, bfp = pad_wb(Wf, bf, p2, dout)    # true dout columns -> no padded out

    return {
        "Wg": jnp.asarray(Wg, weight_dtype), "bg": jnp.asarray(bg),
        "W1": jnp.asarray(W1p, weight_dtype), "b1": jnp.asarray(b1p),
        "W2": jnp.asarray(W2p, weight_dtype), "b2": jnp.asarray(b2p),
        "Wf": jnp.asarray(Wfp, weight_dtype), "bf": jnp.asarray(bfp),
        "dout": dout,
    }


def reference_forward(x, params, act_dtype=jnp.float32):
    """Pure-JAX reference using the same precision path as the kernel."""
    h = x.astype(jnp.bfloat16)
    h = jnp.dot(h, params["Wg"], preferred_element_type=jnp.float32) + params["bg"]
    h = jnp.tanh(h.astype(act_dtype)).astype(jnp.bfloat16)
    h = jnp.dot(h, params["W1"], preferred_element_type=jnp.float32) + params["b1"]
    h = jnp.tanh(h.astype(act_dtype)).astype(jnp.bfloat16)
    h = jnp.dot(h, params["W2"], preferred_element_type=jnp.float32) + params["b2"]
    h = jnp.tanh(h.astype(act_dtype)).astype(jnp.bfloat16)
    return jnp.dot(h, params["Wf"], preferred_element_type=jnp.float32) + params["bf"]


def reference_forward_f32(x, params):
    """All-f32 reference (same bf16-stored weights) to bound bf16-path drift."""
    h = x.astype(jnp.float32)
    h = jnp.tanh(h @ params["Wg"].astype(jnp.float32) + params["bg"])
    h = jnp.tanh(h @ params["W1"].astype(jnp.float32) + params["b1"])
    h = jnp.tanh(h @ params["W2"].astype(jnp.float32) + params["b2"])
    return h @ params["Wf"].astype(jnp.float32) + params["bf"]


if __name__ == "__main__":
    # Config consistent with the module's constructor:
    #   mid=32 (single middle width), dout=4, two feature groups over din=8.
    s_groups = {"grp_a": [0, 1, 2], "grp_b": [3, 4, 5, 6, 7]}
    t_groups = {}  # stored by the module but unused in forward
    din, mid, dout = 8, 32, 4
    batch = 300    # deliberately NOT a multiple of the tile: exercises the
                   # ragged last grid block (no host-side padding of x)

    key = jax.random.PRNGKey(0)
    k_params, k_x = jax.random.split(key)
    params = build_params(k_params, din, mid, dout, s_groups)
    x = jax.random.normal(k_x, (batch, din), dtype=jnp.float32)

    act_dtype = _act_dtype()
    out32 = deep_group_net_forward(x, params, act_dtype=act_dtype)
    out32 = jax.block_until_ready(out32)

    # torch `.double()` equivalent: f32 -> f64 cast done on host (no TPU f64).
    out = np.asarray(out32).astype(np.float64)
    assert out.shape == (batch, dout) and out.dtype == np.float64

    # Same-precision-path reference (tight-ish; allows for EUP-vs-XLA tanh).
    ref = np.asarray(reference_forward(x, params, act_dtype)).astype(np.float64)
    assert np.allclose(out, ref, atol=2e-2, rtol=2e-2)

    # All-f32 reference: bounds the bf16 deviation from the torch f32 math.
    # TODO(synk): exact torch-f32/f64 equivalence is not reproduced (bf16
    # MXU path + jax.random init instead of torch RNG); only bounded here.
    ref32 = np.asarray(reference_forward_f32(x, params)).astype(np.float64)
    assert np.allclose(out, ref32, atol=1e-1, rtol=1e-1)

    print("KERNEL_OK")
</pallas_src>

<mosaic_0001>
module attributes {stable_mosaic.version = 11 : i64} {
  func.func @_deep_group_kernel(%arg0: i32, %arg1: memref<152x8xbf16, #tpu.memory_space<vmem>>, %arg2: memref<8x128xbf16, #tpu.memory_space<vmem>>, %arg3: memref<1x128xf32, #tpu.memory_space<vmem>>, %arg4: memref<128x128xbf16, #tpu.memory_space<vmem>>, %arg5: memref<1x128xf32, #tpu.memory_space<vmem>>, %arg6: memref<128x128xbf16, #tpu.memory_space<vmem>>, %arg7: memref<1x128xf32, #tpu.memory_space<vmem>>, %arg8: memref<128x4xbf16, #tpu.memory_space<vmem>>, %arg9: memref<1x4xf32, #tpu.memory_space<vmem>>, %arg10: memref<152x4xf32, #tpu.memory_space<vmem>>) attributes {dimension_semantics = [#tpu.dimension_semantics<parallel>], iteration_bounds = array<i64: 2>, scalar_prefetch = 0 : i64, scratch_operands = 0 : i64, tpu.core_type = #tpu.core_type<tc>, window_params = [{transform_indices = @transform_0, window_bounds = array<i64: 152, 8>}, {pipeline_mode = #tpu.pipeline_mode<synchronous>, transform_indices = @transform_1, window_bounds = array<i64: 8, 128>}, {pipeline_mode = #tpu.pipeline_mode<synchronous>, transform_indices = @transform_2, window_bounds = array<i64: 1, 128>}, {pipeline_mode = #tpu.pipeline_mode<synchronous>, transform_indices = @transform_3, window_bounds = array<i64: 128, 128>}, {pipeline_mode = #tpu.pipeline_mode<synchronous>, transform_indices = @transform_4, window_bounds = array<i64: 1, 128>}, {pipeline_mode = #tpu.pipeline_mode<synchronous>, transform_indices = @transform_5, window_bounds = array<i64: 128, 128>}, {pipeline_mode = #tpu.pipeline_mode<synchronous>, transform_indices = @transform_6, window_bounds = array<i64: 1, 128>}, {pipeline_mode = #tpu.pipeline_mode<synchronous>, transform_indices = @transform_7, window_bounds = array<i64: 128, 4>}, {pipeline_mode = #tpu.pipeline_mode<synchronous>, transform_indices = @transform_8, window_bounds = array<i64: 1, 4>}, {transform_indices = @transform_9, window_bounds = array<i64: 152, 4>}]} {
    %c0 = arith.constant 0 : index
    %c0_0 = arith.constant 0 : index
    %0 = vector.load %arg1[%c0, %c0_0] : memref<152x8xbf16, #tpu.memory_space<vmem>>, vector<152x8xbf16>
    %c0_1 = arith.constant 0 : index
    %c0_2 = arith.constant 0 : index
    %1 = vector.load %arg2[%c0_1, %c0_2] : memref<8x128xbf16, #tpu.memory_space<vmem>>, vector<8x128xbf16>
    %cst = arith.constant dense<0.000000e+00> : vector<152x128xf32>
    %2 = tpu.matmul %0, %1, %cst {dimension_numbers = #tpu.dot_dimension_numbers<[1], [0], [0], [1], [0, 0, 1, 1], [], []>} : vector<152x8xbf16>, vector<8x128xbf16>, vector<152x128xf32> -> vector<152x128xf32>
    %c0_3 = arith.constant 0 : index
    %c0_4 = arith.constant 0 : index
    %3 = vector.load %arg3[%c0_3, %c0_4] : memref<1x128xf32, #tpu.memory_space<vmem>>, vector<1x128xf32>
    %4 = vector.broadcast %3 : vector<1x128xf32> to vector<152x128xf32>
    %5 = arith.addf %2, %4 : vector<152x128xf32>
    %6 = math.tanh %5 : vector<152x128xf32>
    %7 = arith.truncf %6 : vector<152x128xf32> to vector<152x128xbf16>
    %c0_5 = arith.constant 0 : index
    %c0_6 = arith.constant 0 : index
    %8 = vector.load %arg4[%c0_5, %c0_6] : memref<128x128xbf16, #tpu.memory_space<vmem>>, vector<128x128xbf16>
    %cst_7 = arith.constant dense<0.000000e+00> : vector<152x128xf32>
    %9 = tpu.matmul %7, %8, %cst_7 {dimension_numbers = #tpu.dot_dimension_numbers<[1], [0], [0], [1], [0, 0, 1, 1], [], []>} : vector<152x128xbf16>, vector<128x128xbf16>, vector<152x128xf32> -> vector<152x128xf32>
    %c0_8 = arith.constant 0 : index
    %c0_9 = arith.constant 0 : index
    %10 = vector.load %arg5[%c0_8, %c0_9] : memref<1x128xf32, #tpu.memory_space<vmem>>, vector<1x128xf32>
    %11 = vector.broadcast %10 : vector<1x128xf32> to vector<152x128xf32>
    %12 = arith.addf %9, %11 : vector<152x128xf32>
    %13 = math.tanh %12 : vector<152x128xf32>
    %14 = arith.truncf %13 : vector<152x128xf32> to vector<152x128xbf16>
    %c0_10 = arith.constant 0 : index
    %c0_11 = arith.constant 0 : index
    %15 = vector.load %arg6[%c0_10, %c0_11] : memref<128x128xbf16, #tpu.memory_space<vmem>>, vector<128x128xbf16>
    %cst_12 = arith.constant dense<0.000000e+00> : vector<152x128xf32>
    %16 = tpu.matmul %14, %15, %cst_12 {dimension_numbers = #tpu.dot_dimension_numbers<[1], [0], [0], [1], [0, 0, 1, 1], [], []>} : vector<152x128xbf16>, vector<128x128xbf16>, vector<152x128xf32> -> vector<152x128xf32>
    %c0_13 = arith.constant 0 : index
    %c0_14 = arith.constant 0 : index
    %17 = vector.load %arg7[%c0_13, %c0_14] : memref<1x128xf32, #tpu.memory_space<vmem>>, vector<1x128xf32>
    %18 = vector.broadcast %17 : vector<1x128xf32> to vector<152x128xf32>
    %19 = arith.addf %16, %18 : vector<152x128xf32>
    %20 = math.tanh %19 : vector<152x128xf32>
    %21 = arith.truncf %20 : vector<152x128xf32> to vector<152x128xbf16>
    %c0_15 = arith.constant 0 : index
    %c0_16 = arith.constant 0 : index
    %22 = vector.load %arg8[%c0_15, %c0_16] : memref<128x4xbf16, #tpu.memory_space<vmem>>, vector<128x4xbf16>
    %cst_17 = arith.constant dense<0.000000e+00> : vector<152x4xf32>
    %23 = tpu.matmul %21, %22, %cst_17 {dimension_numbers = #tpu.dot_dimension_numbers<[1], [0], [0], [1], [0, 0, 1, 1], [], []>} : vector<152x128xbf16>, vector<128x4xbf16>, vector<152x4xf32> -> vector<152x4xf32>
    %c0_18 = arith.constant 0 : index
    %c0_19 = arith.constant 0 : index
    %24 = vector.load %arg9[%c0_18, %c0_19] : memref<1x4xf32, #tpu.memory_space<vmem>>, vector<1x4xf32>
    %25 = vector.broadcast %24 : vector<1x4xf32> to vector<152x4xf32>
    %26 = arith.addf %23, %25 : vector<152x4xf32>
    %c0_20 = arith.constant 0 : index
    %c0_21 = arith.constant 0 : index
    %27 = vector.load %arg10[%c0_20, %c0_21] : memref<152x4xf32, #tpu.memory_space<vmem>>, vector<152x4xf32>
    tpu.vector_store %arg10[%c0_20, %c0_21], %26 {strides = array<i32>} : memref<152x4xf32, #tpu.memory_space<vmem>>, vector<152x4xf32>,
    return
  }
  func.func @transform_0(%arg0: i32) -> (i32, i32) {
    %c0_i32 = arith.constant 0 : i32
    %c0_i32_0 = arith.constant 0 : i32
    return %arg0, %c0_i32 : i32, i32
  }
  func.func @transform_1(%arg0: i32) -> (i32, i32) {
    %c0_i32 = arith.constant 0 : i32
    %c0_i32_0 = arith.constant 0 : i32
    %c0_i32_1 = arith.constant 0 : i32
    return %c0_i32, %c0_i32_0 : i32, i32
  }
  func.func @transform_2(%arg0: i32) -> (i32, i32) {
    %c0_i32 = arith.constant 0 : i32
    %c0_i32_0 = arith.constant 0 : i32
    %c0_i32_1 = arith.constant 0 : i32
    return %c0_i32, %c0_i32_0 : i32, i32
  }
  func.func @transform_3(%arg0: i32) -> (i32, i32) {
    %c0_i32 = arith.constant 0 : i32
    %c0_i32_0 = arith.constant 0 : i32
    %c0_i32_1 = arith.constant 0 : i32
    return %c0_i32, %c0_i32_0 : i32, i32
  }
  func.func @transform_4(%arg0: i32) -> (i32, i32) {
    %c0_i32 = arith.constant 0 : i32
    %c0_i32_0 = arith.constant 0 : i32
    %c0_i32_1 = arith.constant 0 : i32
    return %c0_i32, %c0_i32_0 : i32, i32
  }
  func.func @transform_5(%arg0: i32) -> (i32, i32) {
    %c0_i32 = arith.constant 0 : i32
    %c0_i32_0 = arith.constant 0 : i32
    %c0_i32_1 = arith.constant 0 : i32
    return %c0_i32, %c0_i32_0 : i32, i32
  }
  func.func @transform_6(%arg0: i32) -> (i32, i32) {
    %c0_i32 = arith.constant 0 : i32
    %c0_i32_0 = arith.constant 0 : i32
    %c0_i32_1 = arith.constant 0 : i32
    return %c0_i32, %c0_i32_0 : i32, i32
  }
  func.func @transform_7(%arg0: i32) -> (i32, i32) {
    %c0_i32 = arith.constant 0 : i32
    %c0_i32_0 = arith.constant 0 : i32
    %c0_i32_1 = arith.constant 0 : i32
    return %c0_i32, %c0_i32_0 : i32, i32
  }
  func.func @transform_8(%arg0: i32) -> (i32, i32) {
    %c0_i32 = arith.constant 0 : i32
    %c0_i32_0 = arith.constant 0 : i32
    %c0_i32_1 = arith.constant 0 : i32
    return %c0_i32, %c0_i32_0 : i32, i32
  }
  func.func @transform_9(%arg0: i32) -> (i32, i32) {
    %c0_i32 = arith.constant 0 : i32
    %c0_i32_0 = arith.constant 0 : i32
    return %arg0, %c0_i32 : i32, i32
  }
}

</mosaic_0001>

<bundles_post_ra>
// kernel: tpu_custom_call.1
= control target key start
LH: loop header
LB: loop body
LE: loop exit
PB: predicated region body
PF: predicated region fallthrough
CT: control target
= control target key end

     0   :  { %s1411_s30 = smov 0   ;;  %s1665_s0 = inlined_call_operand.vmem [shape: bf16[300,8], index: 0, kind: input, shape index: {}]   ;;  %s1666_s1 = inlined_call_operand.vmem [shape: bf16[8,128], index: 1, kind: input, shape index: {}]   ;;  %s1667_s2 = inlined_call_operand.vmem [shape: f32[1,128], index: 2, kind: input, shape index: {}]   ;;  %s1668_s3 = inlined_call_operand.vmem [shape: bf16[128,128], index: 3, kind: input, shape index: {}]   ;;  %s1669_s4 = inlined_call_operand.vmem [shape: f32[1,128], index: 4, kind: input, shape index: {}]   ;;  %s1670_s5 = inlined_call_operand.vmem [shape: bf16[128,128], index: 5, kind: input, shape index: {}]   ;;  %s1671_s6 = inlined_call_operand.vmem [shape: f32[1,128], index: 6, kind: input, shape index: {}]   ;;  %s1672_s7 = inlined_call_operand.vmem [shape: bf16[128,4], index: 7, kind: input, shape index: {}]   ;;  %s1673_s8 = inlined_call_operand.vmem [shape: f32[1,4], index: 8, kind: input, shape index: {}]   ;;  %s1674_s9 = inlined_call_operand.vmem [shape: f32[300,4], index: 9, kind: output, shape index: {}]  }
   0x1 LB: > { %s1043_s10 = sadd.s32 4294967295, %s1359_s30   ;;  %p1047_p0 = scmp.ge.s32.totalorder %s1359_s30, 1  ;;  %s1359_s30 = sphi %s1411_s30, %s19_s30  }
   0x2   : > { %p288_p1 = scmp.lt.s32.totalorder %s1359_s30, 3 }
   0x4   : > { %p289_p2 = pnand %p1047_p0, %p288_p1 }
   0x5   : > { %s324_s13 = smul.u32 (!%p289_p2), 19, %s1043_s10 }
   0x6   : > { %292 = sbr.rel (%p289_p2) target bundleno = 741 (0x2e5), region = 56 }
   0x7   : > { %p325_p3 = scmp.lt.s32.totalorder (!%p289_p2), %s324_s13, 37 }
   0xb   : > { %v356_v0 = vld [vmem:[%s1666_s1] sm:$0xf]  ;;  %vm440_vm0 = vcmask 1043456   ;;  %s1676_s13 = smov (!%p325_p3, %s324_s13), 37  ;;  %vm409_vm1 = vcmask 64512   ;;  %v1210_v8 = vld [vmem:[%s1668_s3 + $0x38] sm:$0xff] }
   0xc   : > { %v442_v1 = vsel %vm440_vm0, %v356_v0, 0  ;;  %s1048_s14 = sshll.u32 %s1676_s13, 2  ;;  %599 = vmatpush.bf16.msra.mxu1 %v1210_v8  ;;  %v1209_v9 = vld [vmem:[%s1668_s3 + $0x30] sm:$0xff]  ;;  %v1208_v10 = vld [vmem:[%s1668_s3 + $0x28] sm:$0xff]  ;;  %v1207_v12 = vld [vmem:[%s1668_s3 + $0x20] sm:$0xff]  ;;  %s1049_s15 = sshll.u32 %s1676_s13, 3 }
   0xd   : > { %451 = vmatpush.bf16.msra.mxu0 %v442_v1  ;;  %s1428_s17 = scalar_lea.vmem %s1665_s0, %s1048_s14  ;;  %v1206_v13 = vld [vmem:[%s1668_s3 + $0x18] sm:$0xff]  ;;  %v1205_v14 = vld [vmem:[%s1668_s3 + $0x10] sm:$0xff]  ;;  %v1204_v15 = vld [vmem:[%s1668_s3 + $0x8] sm:$0xff]  ;;  %s1603_s20 = scalar_lea.vmem %s1674_s9, %s1049_s15  ;;  %vm967_vm2 = vcmask 31744  }
   0xe   : > { %v1194_v2 = vld [vmem:[%s1428_s17] sm:$0xff]  ;;  %v1195_v3 = vld [vmem:[%s1428_s17 + $0x8] sm:$0xff]  ;;  %v1196_v4 = vld [vmem:[%s1428_s17 + $0x10] sm:$0xff] }
   0xf   : > { %v1197_v5 = vld [vmem:[%s1428_s17 + $0x18] sm:$0xff]  ;;  %v1198_v6 = vld [vmem:[%s1428_s17 + $0x20] sm:$0xff]  ;;  %v1199_v7 = vld [vmem:[%s1428_s17 + $0x28] sm:$0xff] }
  0x10   : > { %1086 = vmatmul.msk.bf16.vlgmr.msra.gmra.mxu0 %vm409_vm1, %v1194_v2  ;;  %600 = vmatpush.bf16.msra.mxu1 %v1209_v9  ;;  %v1200_v11 = vld [vmem:[%s1428_s17 + $0x30] sm:$0xff]  ;;  %v1201_v16 = vld [vmem:[%s1428_s17 + $0x38] sm:$0xff]  ;;  %v1203_v17 = vld [vmem:[%s1668_s3] sm:$0xff] }
  0x11   : > { %v1202_v18 = vld [vmem:[%s1428_s17 + $0x40] sm:$0xff]  ;;  %v355_v23 = vld [vmem:[%s1428_s17 + $0x48] sm:$0xf]  ;;  %v1218_v2 = vld [vmem:[%s1670_s5 + $0x38] sm:$0xff] }
  0x12   : > { %v1474_v20 = vld [vmem:[%s1667_s2] ss:$0 sm:$0xff]  ;;  %v398_v25 = vunpack.c.l.b16 %v355_v23  ;;  %754 = vmatpush.bf16.msra.mxu2 %v1218_v2 }
  0x14   : > { %601 = vmatpush.bf16.msra.mxu1 %v1208_v10  ;;  %v408_v26 = vpack.c.b16 %v398_v25, %v398_v25  ;;  %v1215_v10 = vld [vmem:[%s1670_s5 + $0x20] sm:$0xff] }
  0x18   : > { %602 = vmatpush.bf16.msra.mxu1 %v1207_v12 }
  0x1c   : > { %603 = vmatpush.bf16.msra.mxu1 %v1206_v13  ;;  %v1214_v13 = vld [vmem:[%s1670_s5 + $0x18] sm:$0xff] }
  0x20   : > { %1087 = vmatmul.msk.bf16.gmra.mxu0 %vm409_vm1, %v1195_v3  ;;  %604 = vmatpush.bf16.msra.mxu1 %v1205_v14 }
  0x24   : > { %605 = vmatpush.bf16.msra.mxu1 %v1204_v15 }
  0x28   : > { %606 = vmatpush.bf16.msra.mxu1 %v1203_v17 }
  0x30   : > { %1088 = vmatmul.msk.bf16.gmra.mxu0 %vm409_vm1, %v1196_v4 }
  0x40   : > { %1089 = vmatmul.msk.bf16.gmra.mxu0 %vm409_vm1, %v1197_v5  ;;  %v1217_v5 = vld [vmem:[%s1670_s5 + $0x30] sm:$0xff] }
  0x41   : > { %755 = vmatpush.bf16.msra.mxu2 %v1217_v5 }
  0x50   : > { %1090 = vmatmul.msk.bf16.gmra.mxu0 %vm409_vm1, %v1198_v6 }
  0x60   : > { %1091 = vmatmul.msk.bf16.gmra.mxu0 %vm409_vm1, %v1199_v7  ;;  %v1216_v7 = vld [vmem:[%s1670_s5 + $0x28] sm:$0xff] }
  0x61   : > { %756 = vmatpush.bf16.msra.mxu2 %v1216_v7 }
  0x65   : > { %757 = vmatpush.bf16.msra.mxu2 %v1215_v10 }
  0x69   : > { %758 = vmatpush.bf16.msra.mxu2 %v1214_v13 }
  0x70   : > { %1092 = vmatmul.msk.bf16.gmra.mxu0 %vm409_vm1, %v1200_v11 }
  0x80   : > { %1093 = vmatmul.msk.bf16.gmra.mxu0 %vm409_vm1, %v1201_v16  ;;  %v1213_v16 = vld [vmem:[%s1670_s5 + $0x10] sm:$0xff] }
  0x81   : > { %759 = vmatpush.bf16.msra.mxu2 %v1213_v16 }
  0x8d   : > { %v453_v19 = vpop.f32.mrf.mxu0 }
  0x8e   : > { %v454_v21 = vadd.f32 %v1474_v20, %v453_v19 }
  0x90   : > { %1094 = vmatmul.msk.bf16.gmra.mxu0 %vm409_vm1, %v1202_v18  ;;  %1239 = vtanh.f32 %v454_v21  ;;  %v1212_v18 = vld [vmem:[%s1670_s5 + $0x8] sm:$0xff] }
  0x91   : > { %760 = vmatpush.bf16.msra.mxu2 %v1212_v18  ;;  %v1226_v18 = vld [vmem:[%s1672_s7 + $0x38] sm:$0xff] }
  0x92   : > { %909 = vmatpush.bf16.msra.mxu3 %v1226_v18 }
  0x95   : > { %v455_v22 = vpop.f32.mrf.mxu0 }
  0x96   : > { %v456_v24 = vadd.f32 %v1474_v20, %v455_v22  ;;  %v1240_v27 = vpop.eup %1239  ;;  %v1211_v22 = vld [vmem:[%s1670_s5] sm:$0xff] }
  0x97   : > { %761 = vmatpush.bf16.msra.mxu2 %v1211_v22 }
  0x98   : > { %1241 = vtanh.f32 %v456_v24 }
  0x9d   : > { %v458_v28 = vpop.f32.mrf.mxu0 }
  0x9e   : > { %v1242_v29 = vpop.eup %1241  ;;  %v459_v31 = vadd.f32 %v1474_v20, %v458_v28 }
  0x9f   : > { %v521_v30 = vpack.c.bf16 %v1242_v29, %v1240_v27 }
  0xa0   : > { %1095 = vmatmul.msk.bf16.gmra.mxu0 %vm409_vm1, %v408_v26  ;;  %1243 = vtanh.f32 %v459_v31 }
  0xa1   : > { %607 = vmatmul.bf16.vlgmr.msra.gmra.mxu1 %v521_v30 }
  0xa5   : > { %v460_v32 = vpop.f32.mrf.mxu0 }
  0xa6   : > { %v461_v33 = vadd.f32 %v1474_v20, %v460_v32  ;;  %v1244_v34 = vpop.eup %1243 }
  0xa8   : > { %1245 = vtanh.f32 %v461_v33  ;;  %v1524_v33 = vld [vmem:[%s1669_s4] ss:$0 sm:$0xff] }
  0xad   : > { %v463_v35 = vpop.f32.mrf.mxu0 }
  0xae   : > { %v1246_v36 = vpop.eup %1245  ;;  %v464_v38 = vadd.f32 %v1474_v20, %v463_v35 }
  0xaf   : > { %v522_v37 = vpack.c.bf16 %v1246_v36, %v1244_v34 }
  0xb0   : > { %1247 = vtanh.f32 %v464_v38 }
  0xb1   : > { %612 = vmatmul.bf16.gmra.mxu1 %v522_v37 }
  0xb5   : > { %v465_v39 = vpop.f32.mrf.mxu0 }
  0xb6   : > { %v466_v40 = vadd.f32 %v1474_v20, %v465_v39  ;;  %v1248_v41 = vpop.eup %1247 }
  0xb8   : > { %1249 = vtanh.f32 %v466_v40 }
  0xbd   : > { %v468_v42 = vpop.f32.mrf.mxu0 }
  0xbe   : > { %v1250_v43 = vpop.eup %1249  ;;  %v469_v45 = vadd.f32 %v1474_v20, %v468_v42 }
  0xbf   : > { %v523_v44 = vpack.c.bf16 %v1250_v43, %v1248_v41 }
  0xc0   : > { %1251 = vtanh.f32 %v469_v45 }
  0xc1   : > { %617 = vmatmul.bf16.gmra.mxu1 %v523_v44 }
  0xc5   : > { %v470_v46 = vpop.f32.mrf.mxu0 }
  0xc6   : > { %v471_v47 = vadd.f32 %v1474_v20, %v470_v46  ;;  %v1252_v48 = vpop.eup %1251 }
  0xc8   : > { %1253 = vtanh.f32 %v471_v47 }
  0xcd   : > { %v473_v49 = vpop.f32.mrf.mxu0 }
  0xce   : > { %v1254_v50 = vpop.eup %1253  ;;  %v474_v52 = vadd.f32 %v1474_v20, %v473_v49 }
  0xcf   : > { %v524_v51 = vpack.c.bf16 %v1254_v50, %v1252_v48 }
  0xd0   : > { %1255 = vtanh.f32 %v474_v52 }
  0xd1   : > { %622 = vmatmul.bf16.gmra.mxu1 %v524_v51 }
  0xd5   : > { %v475_v53 = vpop.f32.mrf.mxu0 }
  0xd6   : > { %v476_v54 = vadd.f32 %v1474_v20, %v475_v53  ;;  %v1256_v55 = vpop.eup %1255 }
  0xd8   : > { %1257 = vtanh.f32 %v476_v54 }
  0xdd   : > { %v478_v56 = vpop.f32.mrf.mxu0 }
  0xde   : > { %v1258_v57 = vpop.eup %1257  ;;  %v479_v59 = vadd.f32 %v1474_v20, %v478_v56 }
  0xdf   : > { %v525_v58 = vpack.c.bf16 %v1258_v57, %v1256_v55 }
  0xe0   : > { %1259 = vtanh.f32 %v479_v59 }
  0xe1   : > { %627 = vmatmul.bf16.gmra.mxu1 %v525_v58 }
  0xe5   : > { %v480_v60 = vpop.f32.mrf.mxu0 }
  0xe6   : > { %v481_v61 = vadd.f32 %v1474_v20, %v480_v60  ;;  %v1260_v62 = vpop.eup %1259 }
  0xe8   : > { %1261 = vtanh.f32 %v481_v61 }
  0xed   : > { %v483_v63 = vpop.f32.mrf.mxu0 }
  0xee   : > { %v1262_v0 = vpop.eup %1261  ;;  %v484_v3 = vadd.f32 %v1474_v20, %v483_v63 }
  0xef   : > { %v526_v1 = vpack.c.bf16 %v1262_v0, %v1260_v62 }
  0xf0   : > { %1263 = vtanh.f32 %v484_v3 }
  0xf1   : > { %632 = vmatmul.bf16.gmra.mxu1 %v526_v1 }
  0xf5   : > { %v485_v4 = vpop.f32.mrf.mxu0 }
  0xf6   : > { %v486_v6 = vadd.f32 %v1474_v20, %v485_v4  ;;  %v1264_v8 = vpop.eup %1263 }
  0xf8   : > { %1265 = vtanh.f32 %v486_v6 }
  0xfd   : > { %v488_v9 = vpop.f32.mrf.mxu0 }
  0xfe   : > { %v1266_v11 = vpop.eup %1265  ;;  %v489_v14 = vadd.f32 %v1474_v20, %v488_v9 }
  0xff   : > { %v527_v12 = vpack.c.bf16 %v1266_v11, %v1264_v8 }
 0x100   : > { %1267 = vtanh.f32 %v489_v14 }
 0x101   : > { %637 = vmatmul.bf16.gmra.mxu1 %v527_v12 }
 0x105   : > { %v490_v15 = vpop.f32.mrf.mxu0 }
 0x106   : > { %v491_v17 = vadd.f32 %v1474_v20, %v490_v15  ;;  %v1268_v19 = vpop.eup %1267 }
 0x108   : > { %1269 = vtanh.f32 %v491_v17 }
 0x10d   : > { %v493_v21 = vpop.f32.mrf.mxu0 }
 0x10e   : > { %v1270_v23 = vpop.eup %1269  ;;  %v494_v25 = vadd.f32 %v1474_v20, %v493_v21 }
 0x10f   : > { %v528_v24 = vpack.c.bf16 %v1270_v23, %v1268_v19  ;;  %v1225_v19 = vld [vmem:[%s1672_s7 + $0x30] sm:$0xff] }
 0x110   : > { %1271 = vtanh.f32 %v494_v25  ;;  %910 = vmatpush.bf16.msra.mxu3 %v1225_v19  ;;  %v1224_v25 = vld [vmem:[%s1672_s7 + $0x28] sm:$0xff] }
 0x111   : > { %642 = vmatmul.bf16.gmra.mxu1 %v528_v24 }
 0x114   : > { %911 = vmatpush.bf16.msra.mxu3 %v1224_v25 }
 0x115   : > { %v495_v26 = vpop.f32.mrf.mxu0 }
 0x116   : > { %v496_v27 = vadd.f32 %v1474_v20, %v495_v26  ;;  %v1272_v28 = vpop.eup %1271 }
 0x118   : > { %1273 = vtanh.f32 %v496_v27  ;;  %v1223_v27 = vld [vmem:[%s1672_s7 + $0x20] sm:$0xff] }
 0x119   : > { %912 = vmatpush.bf16.msra.mxu3 %v1223_v27 }
 0x11d   : > { %v498_v29 = vpop.f32.mrf.mxu0 }
 0x11e   : > { %v1274_v30 = vpop.eup %1273  ;;  %v608_v31 = vpop.f32.mrf.mxu1  ;;  %v499_v34 = vadd.f32 %v1474_v20, %v498_v29 }
 0x11f   : > { %v529_v32 = vpack.c.bf16 %v1274_v30, %v1272_v28  ;;  %v609_v35 = vadd.f32 %v1524_v33, %v608_v31  ;;  %v1222_v30 = vld [vmem:[%s1672_s7 + $0x18] sm:$0xff]  ;;  %v1221_v31 = vld [vmem:[%s1672_s7 + $0x10] sm:$0xff] }
 0x120   : > { %1275 = vtanh.f32 %v499_v34  ;;  %913 = vmatpush.bf16.msra.mxu3 %v1222_v30 }
 0x121   : > { %647 = vmatmul.bf16.gmra.mxu1 %v529_v32  ;;  %1277 = vtanh.f32 %v609_v35 }
 0x124   : > { %914 = vmatpush.bf16.msra.mxu3 %v1221_v31 }
 0x125   : > { %v500_v36 = vpop.f32.mrf.mxu0 }
 0x126   : > { %v610_v37 = vpop.f32.mrf.mxu1  ;;  %v1276_v39 = vpop.eup %1275 }
 0x127   : > { %v611_v38 = vadd.f32 %v1524_v33, %v610_v37  ;;  %v530_v40 = vpack.c.bf16 %v1276_v39, %v1276_v39  ;;  %v1278_v41 = vpop.eup %1277  ;;  %v1220_v37 = vld [vmem:[%s1672_s7 + $0x8] sm:$0xff]  ;;  %v1219_v39 = vld [vmem:[%s1672_s7] sm:$0xff] }
 0x128   : > { %915 = vmatpush.bf16.msra.mxu3 %v1220_v37 }
 0x129   : > { %1279 = vtanh.f32 %v611_v38 }
 0x12c   : > { %916 = vmatpush.bf16.msra.mxu3 %v1219_v39 }
 0x12e   : > { %v613_v42 = vpop.f32.mrf.mxu1 }
 0x12f   : > { %v1280_v43 = vpop.eup %1279  ;;  %v614_v20 = vadd.f32 %v1524_v33, %v613_v42 }
 0x130   : > { %v676_v44 = vpack.c.bf16 %v1280_v43, %v1278_v41 }
 0x131   : > { %652 = vmatmul.bf16.gmra.mxu1 %v530_v40  ;;  %1281 = vtanh.f32 %v614_v20 }
 0x132   : > { %762 = vmatmul.bf16.vlgmr.msra.gmra.mxu2 %v676_v44 }
 0x136   : > { %v615_v45 = vpop.f32.mrf.mxu1 }
 0x137   : > { %v616_v46 = vadd.f32 %v1524_v33, %v615_v45  ;;  %v1282_v47 = vpop.eup %1281 }
 0x139   : > { %1283 = vtanh.f32 %v616_v46 }
 0x13e   : > { %v618_v48 = vpop.f32.mrf.mxu1 }
 0x13f   : > { %v1284_v49 = vpop.eup %1283  ;;  %v619_v51 = vadd.f32 %v1524_v33, %v618_v48  ;;  %v1573_v48 = vld [vmem:[%s1671_s6] ss:$0 sm:$0xff] }
 0x140   : > { %v677_v50 = vpack.c.bf16 %v1284_v49, %v1282_v47 }
 0x141   : > { %1285 = vtanh.f32 %v619_v51 }
 0x142   : > { %767 = vmatmul.bf16.gmra.mxu2 %v677_v50 }
 0x146   : > { %v620_v52 = vpop.f32.mrf.mxu1 }
 0x147   : > { %v621_v53 = vadd.f32 %v1524_v33, %v620_v52  ;;  %v1286_v54 = vpop.eup %1285 }
 0x149   : > { %1287 = vtanh.f32 %v621_v53 }
 0x14e   : > { %v623_v55 = vpop.f32.mrf.mxu1 }
 0x14f   : > { %v1288_v56 = vpop.eup %1287  ;;  %v624_v58 = vadd.f32 %v1524_v33, %v623_v55 }
 0x150   : > { %v678_v57 = vpack.c.bf16 %v1288_v56, %v1286_v54 }
 0x151   : > { %1289 = vtanh.f32 %v624_v58 }
 0x152   : > { %772 = vmatmul.bf16.gmra.mxu2 %v678_v57 }
 0x156   : > { %v625_v59 = vpop.f32.mrf.mxu1 }
 0x157   : > { %v626_v60 = vadd.f32 %v1524_v33, %v625_v59  ;;  %v1290_v61 = vpop.eup %1289 }
 0x159   : > { %1291 = vtanh.f32 %v626_v60 }
 0x15e   : > { %v628_v62 = vpop.f32.mrf.mxu1 }
 0x15f   : > { %v1292_v63 = vpop.eup %1291  ;;  %v629_v1 = vadd.f32 %v1524_v33, %v628_v62 }
 0x160   : > { %v679_v0 = vpack.c.bf16 %v1292_v63, %v1290_v61 }
 0x161   : > { %1293 = vtanh.f32 %v629_v1 }
 0x162   : > { %777 = vmatmul.bf16.gmra.mxu2 %v679_v0 }
 0x166   : > { %v630_v2 = vpop.f32.mrf.mxu1 }
 0x167   : > { %v631_v3 = vadd.f32 %v1524_v33, %v630_v2  ;;  %v1294_v4 = vpop.eup %1293 }
 0x169   : > { %1295 = vtanh.f32 %v631_v3 }
 0x16e   : > { %v633_v5 = vpop.f32.mrf.mxu1 }
 0x16f   : > { %v1296_v6 = vpop.eup %1295  ;;  %v634_v8 = vadd.f32 %v1524_v33, %v633_v5 }
 0x170   : > { %v680_v7 = vpack.c.bf16 %v1296_v6, %v1294_v4 }
 0x171   : > { %1297 = vtanh.f32 %v634_v8 }
 0x172   : > { %782 = vmatmul.bf16.gmra.mxu2 %v680_v7 }
 0x176   : > { %v635_v9 = vpop.f32.mrf.mxu1 }
 0x177   : > { %v636_v10 = vadd.f32 %v1524_v33, %v635_v9  ;;  %v1298_v11 = vpop.eup %1297 }
 0x179   : > { %1299 = vtanh.f32 %v636_v10 }
 0x17e   : > { %v638_v12 = vpop.f32.mrf.mxu1 }
 0x17f   : > { %v1300_v13 = vpop.eup %1299  ;;  %v639_v15 = vadd.f32 %v1524_v33, %v638_v12 }
 0x180   : > { %v681_v14 = vpack.c.bf16 %v1300_v13, %v1298_v11 }
 0x181   : > { %1301 = vtanh.f32 %v639_v15 }
 0x182   : > { %787 = vmatmul.bf16.gmra.mxu2 %v681_v14 }
 0x186   : > { %v640_v16 = vpop.f32.mrf.mxu1 }
 0x187   : > { %v641_v17 = vadd.f32 %v1524_v33, %v640_v16  ;;  %v1302_v21 = vpop.eup %1301 }
 0x189   : > { %1303 = vtanh.f32 %v641_v17 }
 0x18e   : > { %v643_v22 = vpop.f32.mrf.mxu1 }
 0x18f   : > { %v1304_v23 = vpop.eup %1303  ;;  %v644_v26 = vadd.f32 %v1524_v33, %v643_v22 }
 0x190   : > { %v682_v24 = vpack.c.bf16 %v1304_v23, %v1302_v21 }
 0x191   : > { %1305 = vtanh.f32 %v644_v26 }
 0x192   : > { %792 = vmatmul.bf16.gmra.mxu2 %v682_v24 }
 0x196   : > { %v645_v28 = vpop.f32.mrf.mxu1 }
 0x197   : > { %v646_v29 = vadd.f32 %v1524_v33, %v645_v28  ;;  %v1306_v32 = vpop.eup %1305 }
 0x199   : > { %1307 = vtanh.f32 %v646_v29 }
 0x19e   : > { %v648_v34 = vpop.f32.mrf.mxu1 }
 0x19f   : > { %v1308_v35 = vpop.eup %1307  ;;  %v649_v38 = vadd.f32 %v1524_v33, %v648_v34 }
 0x1a0   : > { %v683_v36 = vpack.c.bf16 %v1308_v35, %v1306_v32 }
 0x1a1   : > { %1309 = vtanh.f32 %v649_v38 }
 0x1a2   : > { %797 = vmatmul.bf16.gmra.mxu2 %v683_v36 }
 0x1a6   : > { %v650_v40 = vpop.f32.mrf.mxu1 }
 0x1a7   : > { %v651_v41 = vadd.f32 %v1524_v33, %v650_v40  ;;  %v1310_v42 = vpop.eup %1309 }
 0x1a9   : > { %1311 = vtanh.f32 %v651_v41 }
 0x1ae   : > { %v653_v43 = vpop.f32.mrf.mxu1 }
 0x1af   : > { %v1312_v44 = vpop.eup %1311  ;;  %v654_v45 = vadd.f32 %v1524_v33, %v653_v43 }
 0x1b0   : > { %v684_v20 = vpack.c.bf16 %v1312_v44, %v1310_v42 }
 0x1b1   : > { %1313 = vtanh.f32 %v654_v45 }
 0x1b2   : > { %802 = vmatmul.bf16.gmra.mxu2 %v684_v20 }
 0x1b5   : > { %v763_v46 = vpop.f32.mrf.mxu2 }
 0x1b6   : > { %v655_v47 = vpop.f32.mrf.mxu1  ;;  %v764_v50 = vadd.f32 %v1573_v48, %v763_v46 }
 0x1b7   : > { %v1314_v49 = vpop.eup %1313 }
 0x1b8   : > { %v685_v53 = vpack.c.bf16 %v1314_v49, %v1314_v49  ;;  %1315 = vtanh.f32 %v764_v50 }
 0x1bd   : > { %v765_v51 = vpop.f32.mrf.mxu2 }
 0x1be   : > { %v766_v52 = vadd.f32 %v1573_v48, %v765_v51  ;;  %v1316_v33 = vpop.eup %1315 }
 0x1c0   : > { %1317 = vtanh.f32 %v766_v52  ;;  %v1598_v52 = vld [vmem:[%s1673_s8] ss:$0 sm:$0xff] }
 0x1c2   : > { %807 = vmatmul.bf16.gmra.mxu2 %v685_v53 }
 0x1c5   : > { %v768_v54 = vpop.f32.mrf.mxu2 }
 0x1c6   : > { %v1318_v55 = vpop.eup %1317  ;;  %v769_v57 = vadd.f32 %v1573_v48, %v768_v54 }
 0x1c7   : > { %v831_v56 = vpack.c.bf16 %v1318_v55, %v1316_v33 }
 0x1c8   : > { %1319 = vtanh.f32 %v769_v57 }
 0x1c9   : > { %917 = vmatmul.bf16.vlgmr.msra.gmra.mxu3 %v831_v56 }
 0x1cd   : > { %v770_v58 = vpop.f32.mrf.mxu2 }
 0x1ce   : > { %v771_v59 = vadd.f32 %v1573_v48, %v770_v58  ;;  %v1320_v60 = vpop.eup %1319 }
 0x1d0   : > { %1321 = vtanh.f32 %v771_v59 }
 0x1d5   : > { %v773_v61 = vpop.f32.mrf.mxu2 }
 0x1d6   : > { %v1322_v62 = vpop.eup %1321  ;;  %v774_v0 = vadd.f32 %v1573_v48, %v773_v61 }
 0x1d7   : > { %v832_v63 = vpack.c.bf16 %v1322_v62, %v1320_v60 }
 0x1d8   : > { %1323 = vtanh.f32 %v774_v0 }
 0x1d9   : > { %922 = vmatmul.bf16.gmra.mxu3 %v832_v63 }
 0x1dd   : > { %v775_v1 = vpop.f32.mrf.mxu2 }
 0x1de   : > { %v776_v2 = vadd.f32 %v1573_v48, %v775_v1  ;;  %v1324_v3 = vpop.eup %1323 }
 0x1e0   : > { %1325 = vtanh.f32 %v776_v2 }
 0x1e5   : > { %v778_v4 = vpop.f32.mrf.mxu2 }
 0x1e6   : > { %v1326_v5 = vpop.eup %1325  ;;  %v779_v7 = vadd.f32 %v1573_v48, %v778_v4 }
 0x1e7   : > { %v833_v6 = vpack.c.bf16 %v1326_v5, %v1324_v3 }
 0x1e8   : > { %1327 = vtanh.f32 %v779_v7 }
 0x1e9   : > { %927 = vmatmul.bf16.gmra.mxu3 %v833_v6 }
 0x1ed   : > { %v780_v8 = vpop.f32.mrf.mxu2 }
 0x1ee   : > { %v781_v9 = vadd.f32 %v1573_v48, %v780_v8  ;;  %v1328_v10 = vpop.eup %1327 }
 0x1f0   : > { %1329 = vtanh.f32 %v781_v9 }
 0x1f5   : > { %v783_v11 = vpop.f32.mrf.mxu2 }
 0x1f6   : > { %v1330_v12 = vpop.eup %1329  ;;  %v784_v14 = vadd.f32 %v1573_v48, %v783_v11 }
 0x1f7   : > { %v834_v13 = vpack.c.bf16 %v1330_v12, %v1328_v10 }
 0x1f8   : > { %1331 = vtanh.f32 %v784_v14 }
 0x1f9   : > { %932 = vmatmul.bf16.gmra.mxu3 %v834_v13 }
 0x1fd   : > { %v785_v15 = vpop.f32.mrf.mxu2 }
 0x1fe   : > { %v786_v16 = vadd.f32 %v1573_v48, %v785_v15  ;;  %v1332_v17 = vpop.eup %1331 }
 0x200   : > { %1333 = vtanh.f32 %v786_v16 }
 0x205   : > { %v788_v18 = vpop.f32.mrf.mxu2 }
 0x206   : > { %v1334_v19 = vpop.eup %1333  ;;  %v789_v22 = vadd.f32 %v1573_v48, %v788_v18 }
 0x207   : > { %v835_v21 = vpack.c.bf16 %v1334_v19, %v1332_v17 }
 0x208   : > { %1335 = vtanh.f32 %v789_v22 }
 0x209   : > { %937 = vmatmul.bf16.gmra.mxu3 %v835_v21 }
 0x20d   : > { %v790_v23 = vpop.f32.mrf.mxu2 }
 0x20e   : > { %v791_v24 = vadd.f32 %v1573_v48, %v790_v23  ;;  %v1336_v25 = vpop.eup %1335 }
 0x210   : > { %1337 = vtanh.f32 %v791_v24 }
 0x215   : > { %v793_v26 = vpop.f32.mrf.mxu2 }
 0x216   : > { %v1338_v27 = vpop.eup %1337  ;;  %v794_v29 = vadd.f32 %v1573_v48, %v793_v26 }
 0x217   : > { %v836_v28 = vpack.c.bf16 %v1338_v27, %v1336_v25 }
 0x218   : > { %1339 = vtanh.f32 %v794_v29 }
 0x219   : > { %942 = vmatmul.bf16.gmra.mxu3 %v836_v28 }
 0x21d   : > { %v795_v30 = vpop.f32.mrf.mxu2 }
 0x21e   : > { %v796_v31 = vadd.f32 %v1573_v48, %v795_v30  ;;  %v1340_v32 = vpop.eup %1339 }
 0x220   : > { %1341 = vtanh.f32 %v796_v31 }
 0x225   : > { %v798_v34 = vpop.f32.mrf.mxu2 }
 0x226   : > { %v1342_v35 = vpop.eup %1341  ;;  %v799_v37 = vadd.f32 %v1573_v48, %v798_v34 }
 0x227   : > { %v837_v36 = vpack.c.bf16 %v1342_v35, %v1340_v32 }
 0x228   : > { %1343 = vtanh.f32 %v799_v37 }
 0x229   : > { %947 = vmatmul.bf16.gmra.mxu3 %v837_v36 }
 0x22d   : > { %v800_v38 = vpop.f32.mrf.mxu2 }
 0x22e   : > { %v801_v39 = vadd.f32 %v1573_v48, %v800_v38  ;;  %v1344_v40 = vpop.eup %1343 }
 0x230   : > { %1345 = vtanh.f32 %v801_v39 }
 0x235   : > { %v803_v41 = vpop.f32.mrf.mxu2 }
 0x236   : > { %v1346_v42 = vpop.eup %1345  ;;  %v804_v44 = vadd.f32 %v1573_v48, %v803_v41 }
 0x237   : > { %v838_v43 = vpack.c.bf16 %v1346_v42, %v1344_v40 }
 0x238   : > { %1347 = vtanh.f32 %v804_v44 }
 0x239   : > { %952 = vmatmul.bf16.gmra.mxu3 %v838_v43 }
 0x23d   : > { %v805_v20 = vpop.f32.mrf.mxu2 }
 0x23e   : > { %v806_v45 = vadd.f32 %v1573_v48, %v805_v20  ;;  %v1348_v46 = vpop.eup %1347 }
 0x240   : > { %1349 = vtanh.f32 %v806_v45 }
 0x245   : > { %v808_v47 = vpop.f32.mrf.mxu2 }
 0x246   : > { %v1350_v49 = vpop.eup %1349  ;;  %v809_v51 = vadd.f32 %v1573_v48, %v808_v47 }
 0x247   : > { %v839_v50 = vpack.c.bf16 %v1350_v49, %v1348_v46 }
 0x248   : > { %1351 = vtanh.f32 %v809_v51 }
 0x249   : > { %957 = vmatmul.bf16.gmra.mxu3 %v839_v50 }
 0x24c   : > { %v918_v53 = vpop.f32.mrf.mxu3 }
 0x24d   : > { %v919_v48 = vadd.f32 %v1598_v52, %v918_v53  ;;  %v810_v33 = vpop.f32.mrf.mxu2 }
 0x24e   : > { %v1352_v54 = vpop.eup %1351 }
 0x24f   : > { %968 = vst.msk [vmem:[%s1603_s20] sm:$0xff] %vm967_vm2, %v919_v48  ;;  %v840_v57 = vpack.c.bf16 %v1352_v54, %v1352_v54 }
 0x254   : > { %v920_v55 = vpop.f32.mrf.mxu3 }
 0x255   : > { %v921_v56 = vadd.f32 %v1598_v52, %v920_v55 }
 0x257   : > { %969 = vst.msk [vmem:[%s1603_s20 + $0x8] sm:$0xff] %vm967_vm2, %v921_v56 }
 0x259   : > { %962 = vmatmul.bf16.gmra.mxu3 %v840_v57 }
 0x25c   : > { %v923_v58 = vpop.f32.mrf.mxu3 }
 0x25d   : > { %v924_v59 = vadd.f32 %v1598_v52, %v923_v58 }
 0x25f   : > { %970 = vst.msk [vmem:[%s1603_s20 + $0x10] sm:$0xff] %vm967_vm2, %v924_v59 }
 0x264   : > { %v925_v60 = vpop.f32.mrf.mxu3 }
 0x265   : > { %v926_v61 = vadd.f32 %v1598_v52, %v925_v60 }
 0x267   : > { %971 = vst.msk [vmem:[%s1603_s20 + $0x18] sm:$0xff] %vm967_vm2, %v926_v61 }
 0x26c   : > { %v928_v62 = vpop.f32.mrf.mxu3 }
 0x26d   : > { %v929_v63 = vadd.f32 %v1598_v52, %v928_v62 }
 0x26f   : > { %972 = vst.msk [vmem:[%s1603_s20 + $0x20] sm:$0xff] %vm967_vm2, %v929_v63 }
 0x274   : > { %v930_v0 = vpop.f32.mrf.mxu3 }
 0x275   : > { %v931_v1 = vadd.f32 %v1598_v52, %v930_v0 }
 0x277   : > { %973 = vst.msk [vmem:[%s1603_s20 + $0x28] sm:$0xff] %vm967_vm2, %v931_v1 }
 0x27c   : > { %v933_v2 = vpop.f32.mrf.mxu3 }
 0x27d   : > { %v934_v3 = vadd.f32 %v1598_v52, %v933_v2 }
 0x27f   : > { %974 = vst.msk [vmem:[%s1603_s20 + $0x30] sm:$0xff] %vm967_vm2, %v934_v3 }
 0x284   : > { %v935_v4 = vpop.f32.mrf.mxu3 }
 0x285   : > { %v936_v5 = vadd.f32 %v1598_v52, %v935_v4 }
 0x287   : > { %975 = vst.msk [vmem:[%s1603_s20 + $0x38] sm:$0xff] %vm967_vm2, %v936_v5 }
 0x28c   : > { %v938_v6 = vpop.f32.mrf.mxu3 }
 0x28d   : > { %v939_v7 = vadd.f32 %v1598_v52, %v938_v6 }
 0x28f   : > { %976 = vst.msk [vmem:[%s1603_s20 + $0x40] sm:$0xff] %vm967_vm2, %v939_v7 }
 0x294   : > { %v940_v8 = vpop.f32.mrf.mxu3 }
 0x295   : > { %v941_v9 = vadd.f32 %v1598_v52, %v940_v8 }
 0x297   : > { %977 = vst.msk [vmem:[%s1603_s20 + $0x48] sm:$0xff] %vm967_vm2, %v941_v9 }
 0x29c   : > { %v943_v10 = vpop.f32.mrf.mxu3 }
 0x29d   : > { %v944_v11 = vadd.f32 %v1598_v52, %v943_v10 }
 0x29f   : > { %978 = vst.msk [vmem:[%s1603_s20 + $0x50] sm:$0xff] %vm967_vm2, %v944_v11 }
 0x2a4   : > { %v945_v12 = vpop.f32.mrf.mxu3 }
 0x2a5   : > { %v946_v13 = vadd.f32 %v1598_v52, %v945_v12 }
 0x2a7   : > { %979 = vst.msk [vmem:[%s1603_s20 + $0x58] sm:$0xff] %vm967_vm2, %v946_v13 }
 0x2ac   : > { %v948_v14 = vpop.f32.mrf.mxu3 }
 0x2ad   : > { %v949_v15 = vadd.f32 %v1598_v52, %v948_v14 }
 0x2af   : > { %980 = vst.msk [vmem:[%s1603_s20 + $0x60] sm:$0xff] %vm967_vm2, %v949_v15 }
 0x2b4   : > { %v950_v16 = vpop.f32.mrf.mxu3 }
 0x2b5   : > { %v951_v17 = vadd.f32 %v1598_v52, %v950_v16 }
 0x2b7   : > { %981 = vst.msk [vmem:[%s1603_s20 + $0x68] sm:$0xff] %vm967_vm2, %v951_v17 }
 0x2bc   : > { %v953_v18 = vpop.f32.mrf.mxu3 }
 0x2bd   : > { %v954_v19 = vadd.f32 %v1598_v52, %v953_v18 }
 0x2bf   : > { %982 = vst.msk [vmem:[%s1603_s20 + $0x70] sm:$0xff] %vm967_vm2, %v954_v19 }
 0x2c4   : > { %v955_v21 = vpop.f32.mrf.mxu3 }
 0x2c5   : > { %v956_v22 = vadd.f32 %v1598_v52, %v955_v21 }
 0x2c7   : > { %983 = vst.msk [vmem:[%s1603_s20 + $0x78] sm:$0xff] %vm967_vm2, %v956_v22 }
 0x2cc   : > { %v958_v23 = vpop.f32.mrf.mxu3 }
 0x2cd   : > { %v959_v24 = vadd.f32 %v1598_v52, %v958_v23 }
 0x2cf   : > { %984 = vst.msk [vmem:[%s1603_s20 + $0x80] sm:$0xff] %vm967_vm2, %v959_v24 }
 0x2d4   : > { %v960_v25 = vpop.f32.mrf.mxu3 }
 0x2d5   : > { %v961_v26 = vadd.f32 %v1598_v52, %v960_v25 }
 0x2d7   : > { %985 = vst.msk [vmem:[%s1603_s20 + $0x88] sm:$0xff] %vm967_vm2, %v961_v26 }
 0x2dc   : > { %v963_v27 = vpop.f32.mrf.mxu3 }
 0x2dd   : > { %v964_v28 = vadd.f32 %v1598_v52, %v963_v27 }
 0x2df   : > { %986 = vst.msk [vmem:[%s1603_s20 + $0x90] sm:$0xff] %vm967_vm2, %v964_v28 }
 0x2e4   : > { %v965_v29 = vpop.f32.mrf.mxu3 }
 0x2e5 PF: > { %s19_s30 = sadd.s32 1, %s1359_s30  }
 0x2e6   : > { %p16_p4 = scmp.ge.s32.totalorder %s19_s30, 4  }
 0x2e8   :  { %18 = sbr.rel (!%p16_p4) target bundleno = 1 (0x1), region = 86 }

</bundles_post_ra>
